<compile_context>
chip_gen: v6e
topology: v6e:2x2x1
jax: 0.10.0
libtpu: 0.0.40
codegen_flags: <defaults>
</compile_context>

<pallas_src>
import functools
import math

import jax
import jax.numpy as jnp
import numpy as np
from jax import lax
from jax.experimental import pallas as pl
from jax.experimental.pallas import tpu as pltpu


def _round_up(x, m):
    return ((x + m - 1) // m) * m


def _cdiv(a, b):
    return (a + b - 1) // b


# -----------------------------------------------------------------------------
# Fused kernel: per row-tile partial sums of every active loss term.
# Packed layouts (G rays per 128-lane row):
#   beta_ref / weights / sun / trans / wsc : (tile_rows, G*S)   lane-dense
#   tgt_ref  / rgb                         : (tile_rows, G*C)
#   segS_ref : (G*S, G) 0/1 block-diag  -> per-ray sum over S via MXU dot
#   segC_ref : (G*C, G) 0/1 block-diag  -> per-ray sum over C via MXU dot
# Output block: (8, n_out) partial sums (row 0 meaningful).
# -----------------------------------------------------------------------------
def _fused_kernel(segS_ref, segC_ref, beta_ref, tgt_ref, *rest,
                  beta_min, n_typs, has_solar, r_total, tile_rows, needs_mask):
    out_ref = rest[-1]
    refs = rest[:-1]

    seg_s = segS_ref[...].astype(jnp.float32)      # (G*S, G)
    seg_c = segC_ref[...].astype(jnp.float32)      # (G*C, G)
    b = beta_ref[...].astype(jnp.float32)          # (TR, G*S)  shared
    gt = tgt_ref[...].astype(jnp.float32)          # (TR, G*C)  shared

    if needs_mask:
        # Only the last tile has out-of-bounds rows (stale VMEM data); mask
        # them with a NaN-safe select applied to already-reduced data.
        row0 = pl.program_id(0) * tile_rows
        ridx = lax.broadcasted_iota(jnp.int32, (tile_rows, 1), 0) + row0
        valid = ridx < r_total                     # (TR, 1) bool
    else:
        valid = None

    def reduce_rows(x):                            # x: (TR, k)
        if valid is not None:
            x = jnp.where(valid, x, 0.0)
        return jnp.sum(x, keepdims=True)           # (1, 1)

    parts = []
    k = 0
    for _ in range(n_typs):
        w = refs[k][...].astype(jnp.float32)       # (TR, G*S)
        rgb = refs[k + 1][...].astype(jnp.float32)  # (TR, G*C)
        k += 2

        # Per-ray beta via MXU segment-sum: (TR, G*S) @ (G*S, G) -> (TR, G)
        beta = jnp.dot(w * b, seg_s, preferred_element_type=jnp.float32) + beta_min
        inv = pl.reciprocal(beta, approx=False)                          # EUP
        d = rgb - gt
        ssq = jnp.dot(d * d, seg_c, preferred_element_type=jnp.float32)  # (TR, G)

        parts.append(reduce_rows(ssq * (0.5 * inv * inv)))   # color partial
        parts.append(reduce_rows(jnp.log(beta)))             # logbeta partial

        if has_solar:
            sun = refs[k][...].astype(jnp.float32)            # (TR, G*S)
            trans = refs[k + 1][...].astype(jnp.float32)
            wsc = refs[k + 2][...].astype(jnp.float32)
            k += 3
            t2 = (trans - sun) ** 2
            t3 = wsc * sun
            if valid is not None:
                # lane-reduce first so the mask only touches (TR, 1) data
                t2 = jnp.sum(t2, axis=-1, keepdims=True)
                t3 = jnp.sum(t3, axis=-1, keepdims=True)
            parts.append(reduce_rows(t2))                      # term2 partial
            parts.append(reduce_rows(t3))                      # term3 partial

    # One coalesced store of all partials for this tile.
    row = jnp.concatenate(parts, axis=-1)                      # (1, n_out)
    out_ref[...] = jnp.broadcast_to(row, (8, row.shape[-1]))


# -----------------------------------------------------------------------------
# SatNerfLoss.forward equivalent
# -----------------------------------------------------------------------------
def satnerf_loss(inputs, targets, *, lambda_sc=0.0, solar_correction_enabled=True,
                 beta_min=0.05, max_tile_rows=512):
    typs = ['coarse'] + (['fine'] if 'rgb_fine' in inputs else [])
    has_solar = bool(lambda_sc > 0 and solar_correction_enabled)

    n_rays = int(targets.shape[0])
    n_ch = int(targets.shape[-1])
    n_s = int(inputs['weights_coarse'].shape[-1])

    # G rays share one packed row so the last dim is a multiple of 128 lanes.
    g = 128 // math.gcd(n_s, 128)
    padded_n = _round_up(n_rays, g)            # reshape needs N % G == 0
    count_pad = padded_n - n_rays              # zero-padded rays (logbeta fix)
    r_total = padded_n // g                    # packed rows

    raw = [inputs['beta_coarse'], targets]
    for typ in typs:
        raw += [inputs[f'weights_{typ}'], inputs[f'rgb_{typ}']]
        if has_solar:
            raw += [inputs[f'sun_sc_{typ}'], inputs[f'transparency_sc_{typ}'],
                    inputs[f'weights_sc_{typ}']]

    # Row tiling: multiple of 8 sublanes (16 for sub-32-bit dtypes), aim for
    # ~4 grid steps (>= 2 for v7x megacore), cap for VMEM headroom.
    row_align = 16 if any(x.dtype.itemsize < 4 for x in raw) else 8
    max_tr = max(row_align, (int(max_tile_rows) // row_align) * row_align)
    tr = min(_round_up(_cdiv(r_total, 4), row_align), max_tr)
    tile_rows = r_total if tr >= r_total else tr   # full-dim rows when tiny
    num_tiles = _cdiv(r_total, tile_rows)
    needs_mask = num_tiles * tile_rows > r_total

    def _prep(a):
        a2 = a.reshape(a.shape[0], -1)         # (N,S,1)->(N,S); (N,C)->(N,C)
        if count_pad:
            # TODO(synk): this pad is a full HBM copy; have the producer emit
            # ray batches that are a multiple of G to avoid it entirely.
            a2 = jnp.pad(a2, ((0, count_pad), (0, 0)))
        return a2.reshape(r_total, g * a2.shape[1])   # free bitcast reshape

    # 0/1 block-diagonal segment-sum matrices (per-ray reduce on the MXU).
    seg_s_np = np.zeros((g * n_s, g), np.float32)
    seg_s_np[np.arange(g * n_s), np.arange(g * n_s) // n_s] = 1.0
    seg_c_np = np.zeros((g * n_ch, g), np.float32)
    seg_c_np[np.arange(g * n_ch), np.arange(g * n_ch) // n_ch] = 1.0

    operands = [jnp.asarray(seg_s_np), jnp.asarray(seg_c_np)] + [_prep(x) for x in raw]

    in_specs = [pl.BlockSpec((g * n_s, g), lambda i: (0, 0)),
                pl.BlockSpec((g * n_ch, g), lambda i: (0, 0))]
    for x in operands[2:]:
        in_specs.append(pl.BlockSpec((tile_rows, int(x.shape[1])), lambda i: (i, 0)))

    n_out = len(typs) * (2 + (2 if has_solar else 0))

    kernel = functools.partial(
        _fused_kernel, beta_min=float(beta_min), n_typs=len(typs),
        has_solar=has_solar, r_total=r_total, tile_rows=tile_rows,
        needs_mask=needs_mask)

    big_elems = padded_n * n_s * (1 + len(typs) * (1 + (3 if has_solar else 0)))
    bytes_in = sum(int(np.prod(x.shape)) * x.dtype.itemsize for x in operands)
    cost = pl.CostEstimate(
        flops=int(8 * big_elems + 2 * padded_n * (n_s + n_ch) * g * len(typs)),
        transcendentals=int(2 * len(typs) * padded_n),
        bytes_accessed=int(bytes_in + num_tiles * 8 * n_out * 4))

    partials = pl.pallas_call(
        kernel,
        out_shape=jax.ShapeDtypeStruct((num_tiles, 8, n_out), jnp.float32),
        grid_spec=pltpu.PrefetchScalarGridSpec(
            num_scalar_prefetch=0,
            grid=(num_tiles,),
            in_specs=in_specs,
            out_specs=pl.BlockSpec((None, 8, n_out), lambda i: (i, 0, 0)),
        ),
        compiler_params=pltpu.CompilerParams(
            dimension_semantics=("parallel",),
            vmem_limit_bytes=32 * 1024 * 1024),
        cost_estimate=cost,
    )(*operands)

    # Second reduction level: combine the tiny per-tile partials.
    sums = jnp.sum(partials[:, 0, :], axis=0)          # (n_out,)

    log_bmin = float(np.log(beta_min))
    loss_dict = {}
    k = 0
    for typ in typs:
        loss_dict[f'{typ}_color'] = sums[k] / (n_rays * n_ch)
        # Zero-padded rays contribute exactly log(beta_min) each -> analytic fix.
        loss_dict[f'{typ}_logbeta'] = (
            3.0 + (sums[k + 1] - count_pad * log_bmin) / n_rays) / 2.0
        k += 2
        if has_solar:
            loss_dict[f'{typ}_sc_term2'] = (lambda_sc / 3.0) * (sums[k] / n_rays)
            loss_dict[f'{typ}_sc_term3'] = (lambda_sc / 3.0) * (1.0 - sums[k + 1] / n_rays)
            k += 2

    loss = sum(loss_dict.values())
    return loss, loss_dict


# -----------------------------------------------------------------------------
# Pure-JAX reference (mirrors the torch code) for validation
# -----------------------------------------------------------------------------
def satnerf_loss_ref(inputs, targets, *, lambda_sc=0.0,
                     solar_correction_enabled=True, beta_min=0.05):
    loss_dict = {}
    typs = ['coarse'] + (['fine'] if 'rgb_fine' in inputs else [])
    for typ in typs:
        beta = jnp.sum(inputs[f'weights_{typ}'][..., None] * inputs['beta_coarse'],
                       axis=-2) + beta_min
        loss_dict[f'{typ}_color'] = jnp.mean(
            (inputs[f'rgb_{typ}'] - targets) ** 2 / (2 * beta ** 2))
        loss_dict[f'{typ}_logbeta'] = (3 + jnp.mean(jnp.log(beta))) / 2
        if lambda_sc > 0 and solar_correction_enabled:
            sun_sc = jnp.squeeze(inputs[f'sun_sc_{typ}'])
            term2 = jnp.sum((inputs[f'transparency_sc_{typ}'] - sun_sc) ** 2, -1)
            term3 = 1 - jnp.sum(inputs[f'weights_sc_{typ}'] * sun_sc, -1)
            loss_dict[f'{typ}_sc_term2'] = lambda_sc / 3.0 * jnp.mean(term2)
            loss_dict[f'{typ}_sc_term3'] = lambda_sc / 3.0 * jnp.mean(term3)
    return sum(loss_dict.values()), loss_dict


if __name__ == "__main__":
    def make_inputs(key, n, s, with_fine=True, with_solar=True, dtype=jnp.float32):
        ks = jax.random.split(key, 12)
        inputs = {
            'weights_coarse': jax.random.uniform(ks[0], (n, s), jnp.float32),
            'rgb_coarse':     jax.random.uniform(ks[1], (n, 3), jnp.float32),
            'beta_coarse':    jax.random.uniform(ks[2], (n, s, 1), jnp.float32) + 0.1,
        }
        if with_solar:
            inputs.update({
                'sun_sc_coarse':          jax.random.uniform(ks[3], (n, s, 1), jnp.float32),
                'transparency_sc_coarse': jax.random.uniform(ks[4], (n, s), jnp.float32),
                'weights_sc_coarse':      jax.random.uniform(ks[5], (n, s), jnp.float32),
            })
        if with_fine:
            inputs.update({
                'weights_fine': jax.random.uniform(ks[6], (n, s), jnp.float32),
                'rgb_fine':     jax.random.uniform(ks[7], (n, 3), jnp.float32),
            })
            if with_solar:
                inputs.update({
                    'sun_sc_fine':          jax.random.uniform(ks[8], (n, s, 1), jnp.float32),
                    'transparency_sc_fine': jax.random.uniform(ks[9], (n, s), jnp.float32),
                    'weights_sc_fine':      jax.random.uniform(ks[10], (n, s), jnp.float32),
                })
        targets = jax.random.uniform(ks[11], (n, 3), jnp.float32)
        cast = lambda t: jax.tree_util.tree_map(lambda x: x.astype(dtype), t)
        return cast(inputs), cast(targets)

    def check(inputs, targets, lambda_sc, solar_enabled, tol=1e-5, **kw):
        loss, ld = satnerf_loss(inputs, targets, lambda_sc=lambda_sc,
                                solar_correction_enabled=solar_enabled, **kw)
        loss = jax.block_until_ready(loss)
        up = lambda t: jax.tree_util.tree_map(lambda x: x.astype(jnp.float32), t)
        loss_ref, ld_ref = satnerf_loss_ref(up(inputs), up(targets), lambda_sc=lambda_sc,
                                            solar_correction_enabled=solar_enabled)
        np.testing.assert_allclose(np.asarray(loss), np.asarray(loss_ref),
                                   rtol=tol, atol=tol)
        assert set(ld) == set(ld_ref)
        for k in ld_ref:
            np.testing.assert_allclose(np.asarray(ld[k]), np.asarray(ld_ref[k]),
                                       rtol=tol, atol=tol)

    # 1) coarse+fine with solar correction (aligned N: no pad, no mask, 2 tiles).
    inputs, targets = make_inputs(jax.random.PRNGKey(0), 256, 8)
    check(inputs, targets, 0.05, True)

    # 2) ragged N: minimal pad to a multiple of G plus masked last tile.
    inputs2, targets2 = make_inputs(jax.random.PRNGKey(1), 203, 8)
    check(inputs2, targets2, 0.05, True)

    # 3) coarse-only, solar correction disabled (lambda_sc == 0).
    inputs3, targets3 = make_inputs(jax.random.PRNGKey(2), 128, 8,
                                    with_fine=False, with_solar=False)
    check(inputs3, targets3, 0.0, True)

    # 4) different S (16): multi-tile ragged grid with masking, no pad.
    inputs4, targets4 = make_inputs(jax.random.PRNGKey(3), 160, 16,
                                    with_fine=False, with_solar=True)
    check(inputs4, targets4, 0.05, True)

    # 5) bf16 inputs (HBM traffic halved; kernel accumulates in f32).
    inputs5, targets5 = make_inputs(jax.random.PRNGKey(4), 256, 8,
                                    dtype=jnp.bfloat16)
    check(inputs5, targets5, 0.05, True, tol=1e-4)

    # 6) tiny N: single full-dim-row tile branch.
    inputs6, targets6 = make_inputs(jax.random.PRNGKey(5), 40, 8,
                                    with_fine=False, with_solar=False)
    check(inputs6, targets6, 0.0, True)

    print("KERNEL_OK")
</pallas_src>

<mosaic_0001>
module attributes {stable_mosaic.version = 11 : i64} {
  func.func @_fused_kernel(%arg0: i32, %arg1: memref<128x16xf32, #tpu.memory_space<vmem>>, %arg2: memref<48x16xf32, #tpu.memory_space<vmem>>, %arg3: memref<8x128xf32, #tpu.memory_space<vmem>>, %arg4: memref<8x48xf32, #tpu.memory_space<vmem>>, %arg5: memref<8x128xf32, #tpu.memory_space<vmem>>, %arg6: memref<8x48xf32, #tpu.memory_space<vmem>>, %arg7: memref<8x128xf32, #tpu.memory_space<vmem>>, %arg8: memref<8x128xf32, #tpu.memory_space<vmem>>, %arg9: memref<8x128xf32, #tpu.memory_space<vmem>>, %arg10: memref<8x128xf32, #tpu.memory_space<vmem>>, %arg11: memref<8x48xf32, #tpu.memory_space<vmem>>, %arg12: memref<8x128xf32, #tpu.memory_space<vmem>>, %arg13: memref<8x128xf32, #tpu.memory_space<vmem>>, %arg14: memref<8x128xf32, #tpu.memory_space<vmem>>, %arg15: memref<1x8x8xf32, #tpu.memory_space<vmem>>) attributes {dimension_semantics = [#tpu.dimension_semantics<parallel>], iteration_bounds = array<i64: 2>, scalar_prefetch = 0 : i64, scratch_operands = 0 : i64, tpu.core_type = #tpu.core_type<tc>, window_params = [{pipeline_mode = #tpu.pipeline_mode<synchronous>, transform_indices = @transform_0, window_bounds = array<i64: 128, 16>}, {pipeline_mode = #tpu.pipeline_mode<synchronous>, transform_indices = @transform_1, window_bounds = array<i64: 48, 16>}, {transform_indices = @transform_2, window_bounds = array<i64: 8, 128>}, {transform_indices = @transform_3, window_bounds = array<i64: 8, 48>}, {transform_indices = @transform_4, window_bounds = array<i64: 8, 128>}, {transform_indices = @transform_5, window_bounds = array<i64: 8, 48>}, {transform_indices = @transform_6, window_bounds = array<i64: 8, 128>}, {transform_indices = @transform_7, window_bounds = array<i64: 8, 128>}, {transform_indices = @transform_8, window_bounds = array<i64: 8, 128>}, {transform_indices = @transform_9, window_bounds = array<i64: 8, 128>}, {transform_indices = @transform_10, window_bounds = array<i64: 8, 48>}, {transform_indices = @transform_11, window_bounds = array<i64: 8, 128>}, {transform_indices = @transform_12, window_bounds = array<i64: 8, 128>}, {transform_indices = @transform_13, window_bounds = array<i64: 8, 128>}, {transform_indices = @transform_14, window_bounds = array<i64: 1, 8, 8>}]} {
    %c0 = arith.constant 0 : index
    %c0_0 = arith.constant 0 : index
    %0 = vector.load %arg1[%c0, %c0_0] : memref<128x16xf32, #tpu.memory_space<vmem>>, vector<128x16xf32>
    %c0_1 = arith.constant 0 : index
    %c0_2 = arith.constant 0 : index
    %1 = vector.load %arg2[%c0_1, %c0_2] : memref<48x16xf32, #tpu.memory_space<vmem>>, vector<48x16xf32>
    %c0_3 = arith.constant 0 : index
    %c0_4 = arith.constant 0 : index
    %2 = vector.load %arg3[%c0_3, %c0_4] : memref<8x128xf32, #tpu.memory_space<vmem>>, vector<8x128xf32>
    %c0_5 = arith.constant 0 : index
    %c0_6 = arith.constant 0 : index
    %3 = vector.load %arg4[%c0_5, %c0_6] : memref<8x48xf32, #tpu.memory_space<vmem>>, vector<8x48xf32>
    %c0_7 = arith.constant 0 : index
    %c0_8 = arith.constant 0 : index
    %4 = vector.load %arg5[%c0_7, %c0_8] : memref<8x128xf32, #tpu.memory_space<vmem>>, vector<8x128xf32>
    %c0_9 = arith.constant 0 : index
    %c0_10 = arith.constant 0 : index
    %5 = vector.load %arg6[%c0_9, %c0_10] : memref<8x48xf32, #tpu.memory_space<vmem>>, vector<8x48xf32>
    %6 = arith.mulf %4, %2 : vector<8x128xf32>
    %cst = arith.constant dense<0.000000e+00> : vector<8x16xf32>
    %7 = tpu.matmul %6, %0, %cst {dimension_numbers = #tpu.dot_dimension_numbers<[1], [0], [0], [1], [0, 0, 1, 1], [], []>} : vector<8x128xf32>, vector<128x16xf32>, vector<8x16xf32> -> vector<8x16xf32>
    %cst_11 = arith.constant 5.000000e-02 : f32
    %8 = vector.broadcast %cst_11 : f32 to vector<8x16xf32>
    %9 = arith.addf %7, %8 : vector<8x16xf32>
    %10 = tpu.reciprocal %9 : vector<8x16xf32> -> vector<8x16xf32>
    %11 = arith.subf %5, %3 : vector<8x48xf32>
    %12 = arith.mulf %11, %11 : vector<8x48xf32>
    %cst_12 = arith.constant dense<0.000000e+00> : vector<8x16xf32>
    %13 = tpu.matmul %12, %1, %cst_12 {dimension_numbers = #tpu.dot_dimension_numbers<[1], [0], [0], [1], [0, 0, 1, 1], [], []>} : vector<8x48xf32>, vector<48x16xf32>, vector<8x16xf32> -> vector<8x16xf32>
    %cst_13 = arith.constant 5.000000e-01 : f32
    %14 = vector.broadcast %cst_13 : f32 to vector<8x16xf32>
    %15 = arith.mulf %14, %10 : vector<8x16xf32>
    %16 = arith.mulf %15, %10 : vector<8x16xf32>
    %17 = arith.mulf %13, %16 : vector<8x16xf32>
    %18 = vector.shape_cast %17 : vector<8x16xf32> to vector<1x8x16xf32>
    %cst_14 = arith.constant dense<0.000000e+00> : vector<1xf32>
    %19 = vector.multi_reduction <add>, %18, %cst_14 [1, 2] : vector<1x8x16xf32> to vector<1xf32>
    %20 = vector.shape_cast %19 : vector<1xf32> to vector<1x1x1xf32>
    %21 = vector.extract %20[0, 0, 0] : f32 from vector<1x1x1xf32>
    %22 = vector.broadcast %21 : f32 to vector<1x1xf32>
    %23 = math.log %9 : vector<8x16xf32>
    %24 = vector.shape_cast %23 : vector<8x16xf32> to vector<1x8x16xf32>
    %cst_15 = arith.constant dense<0.000000e+00> : vector<1xf32>
    %25 = vector.multi_reduction <add>, %24, %cst_15 [1, 2] : vector<1x8x16xf32> to vector<1xf32>
    %26 = vector.shape_cast %25 : vector<1xf32> to vector<1x1x1xf32>
    %27 = vector.extract %26[0, 0, 0] : f32 from vector<1x1x1xf32>
    %28 = vector.broadcast %27 : f32 to vector<1x1xf32>
    %c0_16 = arith.constant 0 : index
    %c0_17 = arith.constant 0 : index
    %29 = vector.load %arg7[%c0_16, %c0_17] : memref<8x128xf32, #tpu.memory_space<vmem>>, vector<8x128xf32>
    %c0_18 = arith.constant 0 : index
    %c0_19 = arith.constant 0 : index
    %30 = vector.load %arg8[%c0_18, %c0_19] : memref<8x128xf32, #tpu.memory_space<vmem>>, vector<8x128xf32>
    %c0_20 = arith.constant 0 : index
    %c0_21 = arith.constant 0 : index
    %31 = vector.load %arg9[%c0_20, %c0_21] : memref<8x128xf32, #tpu.memory_space<vmem>>, vector<8x128xf32>
    %32 = arith.subf %30, %29 : vector<8x128xf32>
    %33 = arith.mulf %32, %32 : vector<8x128xf32>
    %34 = arith.mulf %31, %29 : vector<8x128xf32>
    %35 = vector.shape_cast %33 : vector<8x128xf32> to vector<1x8x128xf32>
    %cst_22 = arith.constant dense<0.000000e+00> : vector<1xf32>
    %36 = vector.multi_reduction <add>, %35, %cst_22 [1, 2] : vector<1x8x128xf32> to vector<1xf32>
    %37 = vector.shape_cast %36 : vector<1xf32> to vector<1x1x1xf32>
    %38 = vector.extract %37[0, 0, 0] : f32 from vector<1x1x1xf32>
    %39 = vector.broadcast %38 : f32 to vector<1x1xf32>
    %40 = vector.shape_cast %34 : vector<8x128xf32> to vector<1x8x128xf32>
    %cst_23 = arith.constant dense<0.000000e+00> : vector<1xf32>
    %41 = vector.multi_reduction <add>, %40, %cst_23 [1, 2] : vector<1x8x128xf32> to vector<1xf32>
    %42 = vector.shape_cast %41 : vector<1xf32> to vector<1x1x1xf32>
    %43 = vector.extract %42[0, 0, 0] : f32 from vector<1x1x1xf32>
    %44 = vector.broadcast %43 : f32 to vector<1x1xf32>
    %c0_24 = arith.constant 0 : index
    %c0_25 = arith.constant 0 : index
    %45 = vector.load %arg10[%c0_24, %c0_25] : memref<8x128xf32, #tpu.memory_space<vmem>>, vector<8x128xf32>
    %c0_26 = arith.constant 0 : index
    %c0_27 = arith.constant 0 : index
    %46 = vector.load %arg11[%c0_26, %c0_27] : memref<8x48xf32, #tpu.memory_space<vmem>>, vector<8x48xf32>
    %47 = arith.mulf %45, %2 : vector<8x128xf32>
    %cst_28 = arith.constant dense<0.000000e+00> : vector<8x16xf32>
    %48 = tpu.matmul %47, %0, %cst_28 {dimension_numbers = #tpu.dot_dimension_numbers<[1], [0], [0], [1], [0, 0, 1, 1], [], []>} : vector<8x128xf32>, vector<128x16xf32>, vector<8x16xf32> -> vector<8x16xf32>
    %cst_29 = arith.constant 5.000000e-02 : f32
    %49 = vector.broadcast %cst_29 : f32 to vector<8x16xf32>
    %50 = arith.addf %48, %49 : vector<8x16xf32>
    %51 = tpu.reciprocal %50 : vector<8x16xf32> -> vector<8x16xf32>
    %52 = arith.subf %46, %3 : vector<8x48xf32>
    %53 = arith.mulf %52, %52 : vector<8x48xf32>
    %cst_30 = arith.constant dense<0.000000e+00> : vector<8x16xf32>
    %54 = tpu.matmul %53, %1, %cst_30 {dimension_numbers = #tpu.dot_dimension_numbers<[1], [0], [0], [1], [0, 0, 1, 1], [], []>} : vector<8x48xf32>, vector<48x16xf32>, vector<8x16xf32> -> vector<8x16xf32>
    %cst_31 = arith.constant 5.000000e-01 : f32
    %55 = vector.broadcast %cst_31 : f32 to vector<8x16xf32>
    %56 = arith.mulf %55, %51 : vector<8x16xf32>
    %57 = arith.mulf %56, %51 : vector<8x16xf32>
    %58 = arith.mulf %54, %57 : vector<8x16xf32>
    %59 = vector.shape_cast %58 : vector<8x16xf32> to vector<1x8x16xf32>
    %cst_32 = arith.constant dense<0.000000e+00> : vector<1xf32>
    %60 = vector.multi_reduction <add>, %59, %cst_32 [1, 2] : vector<1x8x16xf32> to vector<1xf32>
    %61 = vector.shape_cast %60 : vector<1xf32> to vector<1x1x1xf32>
    %62 = vector.extract %61[0, 0, 0] : f32 from vector<1x1x1xf32>
    %63 = vector.broadcast %62 : f32 to vector<1x1xf32>
    %64 = math.log %50 : vector<8x16xf32>
    %65 = vector.shape_cast %64 : vector<8x16xf32> to vector<1x8x16xf32>
    %cst_33 = arith.constant dense<0.000000e+00> : vector<1xf32>
    %66 = vector.multi_reduction <add>, %65, %cst_33 [1, 2] : vector<1x8x16xf32> to vector<1xf32>
    %67 = vector.shape_cast %66 : vector<1xf32> to vector<1x1x1xf32>
    %68 = vector.extract %67[0, 0, 0] : f32 from vector<1x1x1xf32>
    %69 = vector.broadcast %68 : f32 to vector<1x1xf32>
    %c0_34 = arith.constant 0 : index
    %c0_35 = arith.constant 0 : index
    %70 = vector.load %arg12[%c0_34, %c0_35] : memref<8x128xf32, #tpu.memory_space<vmem>>, vector<8x128xf32>
    %c0_36 = arith.constant 0 : index
    %c0_37 = arith.constant 0 : index
    %71 = vector.load %arg13[%c0_36, %c0_37] : memref<8x128xf32, #tpu.memory_space<vmem>>, vector<8x128xf32>
    %c0_38 = arith.constant 0 : index
    %c0_39 = arith.constant 0 : index
    %72 = vector.load %arg14[%c0_38, %c0_39] : memref<8x128xf32, #tpu.memory_space<vmem>>, vector<8x128xf32>
    %73 = arith.subf %71, %70 : vector<8x128xf32>
    %74 = arith.mulf %73, %73 : vector<8x128xf32>
    %75 = arith.mulf %72, %70 : vector<8x128xf32>
    %76 = vector.shape_cast %74 : vector<8x128xf32> to vector<1x8x128xf32>
    %cst_40 = arith.constant dense<0.000000e+00> : vector<1xf32>
    %77 = vector.multi_reduction <add>, %76, %cst_40 [1, 2] : vector<1x8x128xf32> to vector<1xf32>
    %78 = vector.shape_cast %77 : vector<1xf32> to vector<1x1x1xf32>
    %79 = vector.extract %78[0, 0, 0] : f32 from vector<1x1x1xf32>
    %80 = vector.broadcast %79 : f32 to vector<1x1xf32>
    %81 = vector.shape_cast %75 : vector<8x128xf32> to vector<1x8x128xf32>
    %cst_41 = arith.constant dense<0.000000e+00> : vector<1xf32>
    %82 = vector.multi_reduction <add>, %81, %cst_41 [1, 2] : vector<1x8x128xf32> to vector<1xf32>
    %83 = vector.shape_cast %82 : vector<1xf32> to vector<1x1x1xf32>
    %84 = vector.extract %83[0, 0, 0] : f32 from vector<1x1x1xf32>
    %85 = vector.broadcast %84 : f32 to vector<1x1xf32>
    %86 = tpu.concatenate %22, %28, %39, %44, %63, %69, %80, %85 in 1 : vector<1x1xf32>, vector<1x1xf32>, vector<1x1xf32>, vector<1x1xf32>, vector<1x1xf32>, vector<1x1xf32>, vector<1x1xf32>, vector<1x1xf32> -> vector<1x8xf32>
    %87 = vector.shape_cast %86 : vector<1x8xf32> to vector<1x8xf32>
    %88 = vector.broadcast %87 : vector<1x8xf32> to vector<8x8xf32>
    %c0_42 = arith.constant 0 : index
    %c0_43 = arith.constant 0 : index
    %c0_44 = arith.constant 0 : index
    %89 = vector.load %arg15[%c0_42, %c0_43, %c0_44] : memref<1x8x8xf32, #tpu.memory_space<vmem>>, vector<1x8x8xf32>
    %90 = vector.shape_cast %89 : vector<1x8x8xf32> to vector<8x8xf32>
    %91 = vector.shape_cast %88 : vector<8x8xf32> to vector<1x8x8xf32>
    tpu.vector_store %arg15[%c0_42, %c0_43, %c0_44], %91 {strides = array<i32>} : memref<1x8x8xf32, #tpu.memory_space<vmem>>, vector<1x8x8xf32>,
    return
  }
  func.func @transform_0(%arg0: i32) -> (i32, i32) {
    %c0_i32 = arith.constant 0 : i32
    %c0_i32_0 = arith.constant 0 : i32
    %c0_i32_1 = arith.constant 0 : i32
    return %c0_i32, %c0_i32_0 : i32, i32
  }
  func.func @transform_1(%arg0: i32) -> (i32, i32) {
    %c0_i32 = arith.constant 0 : i32
    %c0_i32_0 = arith.constant 0 : i32
    %c0_i32_1 = arith.constant 0 : i32
    return %c0_i32, %c0_i32_0 : i32, i32
  }
  func.func @transform_2(%arg0: i32) -> (i32, i32) {
    %c0_i32 = arith.constant 0 : i32
    %c0_i32_0 = arith.constant 0 : i32
    return %arg0, %c0_i32 : i32, i32
  }
  func.func @transform_3(%arg0: i32) -> (i32, i32) {
    %c0_i32 = arith.constant 0 : i32
    %c0_i32_0 = arith.constant 0 : i32
    return %arg0, %c0_i32 : i32, i32
  }
  func.func @transform_4(%arg0: i32) -> (i32, i32) {
    %c0_i32 = arith.constant 0 : i32
    %c0_i32_0 = arith.constant 0 : i32
    return %arg0, %c0_i32 : i32, i32
  }
  func.func @transform_5(%arg0: i32) -> (i32, i32) {
    %c0_i32 = arith.constant 0 : i32
    %c0_i32_0 = arith.constant 0 : i32
    return %arg0, %c0_i32 : i32, i32
  }
  func.func @transform_6(%arg0: i32) -> (i32, i32) {
    %c0_i32 = arith.constant 0 : i32
    %c0_i32_0 = arith.constant 0 : i32
    return %arg0, %c0_i32 : i32, i32
  }
  func.func @transform_7(%arg0: i32) -> (i32, i32) {
    %c0_i32 = arith.constant 0 : i32
    %c0_i32_0 = arith.constant 0 : i32
    return %arg0, %c0_i32 : i32, i32
  }
  func.func @transform_8(%arg0: i32) -> (i32, i32) {
    %c0_i32 = arith.constant 0 : i32
    %c0_i32_0 = arith.constant 0 : i32
    return %arg0, %c0_i32 : i32, i32
  }
  func.func @transform_9(%arg0: i32) -> (i32, i32) {
    %c0_i32 = arith.constant 0 : i32
    %c0_i32_0 = arith.constant 0 : i32
    return %arg0, %c0_i32 : i32, i32
  }
  func.func @transform_10(%arg0: i32) -> (i32, i32) {
    %c0_i32 = arith.constant 0 : i32
    %c0_i32_0 = arith.constant 0 : i32
    return %arg0, %c0_i32 : i32, i32
  }
  func.func @transform_11(%arg0: i32) -> (i32, i32) {
    %c0_i32 = arith.constant 0 : i32
    %c0_i32_0 = arith.constant 0 : i32
    return %arg0, %c0_i32 : i32, i32
  }
  func.func @transform_12(%arg0: i32) -> (i32, i32) {
    %c0_i32 = arith.constant 0 : i32
    %c0_i32_0 = arith.constant 0 : i32
    return %arg0, %c0_i32 : i32, i32
  }
  func.func @transform_13(%arg0: i32) -> (i32, i32) {
    %c0_i32 = arith.constant 0 : i32
    %c0_i32_0 = arith.constant 0 : i32
    return %arg0, %c0_i32 : i32, i32
  }
  func.func @transform_14(%arg0: i32) -> (i32, i32, i32) {
    %c0_i32 = arith.constant 0 : i32
    %c0_i32_0 = arith.constant 0 : i32
    %c0_i32_1 = arith.constant 0 : i32
    return %arg0, %c0_i32, %c0_i32_0 : i32, i32, i32
  }
}

</mosaic_0001>

<bundles_post_ra>
// kernel: tpu_custom_call.1
= control target key start
LH: loop header
LB: loop body
LE: loop exit
PB: predicated region body
PF: predicated region fallthrough
CT: control target
= control target key end

     0   :  { %s1971_s0 = inlined_call_operand.vmem [shape: f32[128,16], index: 0, kind: input, shape index: {}]   ;;  %s1972_s1 = inlined_call_operand.vmem [shape: f32[48,16], index: 1, kind: input, shape index: {}]   ;;  %s1973_s2 = inlined_call_operand.vmem [shape: f32[16,128], index: 2, kind: input, shape index: {}]   ;;  %s1974_s3 = inlined_call_operand.vmem [shape: f32[16,48], index: 3, kind: input, shape index: {}]   ;;  %s1975_s4 = inlined_call_operand.vmem [shape: f32[16,128], index: 4, kind: input, shape index: {}]   ;;  %s1976_s5 = inlined_call_operand.vmem [shape: f32[16,48], index: 5, kind: input, shape index: {}]   ;;  %s1977_s6 = inlined_call_operand.vmem [shape: f32[16,128], index: 6, kind: input, shape index: {}]   ;;  %s1978_s7 = inlined_call_operand.vmem [shape: f32[16,128], index: 7, kind: input, shape index: {}]   ;;  %s1979_s8 = inlined_call_operand.vmem [shape: f32[16,128], index: 8, kind: input, shape index: {}]   ;;  %s1980_s9 = inlined_call_operand.vmem [shape: f32[16,128], index: 9, kind: input, shape index: {}]   ;;  %s1981_s10 = inlined_call_operand.vmem [shape: f32[16,48], index: 10, kind: input, shape index: {}]   ;;  %s1982_s11 = inlined_call_operand.vmem [shape: f32[16,128], index: 11, kind: input, shape index: {}]   ;;  %s1983_s12 = inlined_call_operand.vmem [shape: f32[16,128], index: 12, kind: input, shape index: {}]   ;;  %s1984_s13 = inlined_call_operand.vmem [shape: f32[16,128], index: 13, kind: input, shape index: {}]   ;;  %s1985_s14 = inlined_call_operand.hbm [shape: f32[2,8,8], index: 14, kind: output, shape index: {}]  }
   0x1   :  { %1990 = sst [smem:[#allocation9_spill]] %s1971_s0 }
   0x2   :  { %19 = vsyncpa [#allocation3], 0 }
   0x3   :  { %21 = vsyncpa [#allocation3 + $0x1], 0  ;;  %s1681_s29 = smov 0   ;;  %s1683_s30 = smov 0  }
   0x4   :  { %s1685_s15 = smov 0   ;;  %s1687_s16 = smov 0  }
   0x5 LB: > { %1991 = sst [smem:[#allocation5_spill]] %s1597_s15  ;;  %s1702_s17 = sadd.s32 4294967295, %s1601_s16   ;;  %s1601_s16 = sphi %s1687_s16, %s1999_s16   ;;  %s1597_s15 = sphi %s1685_s15, %s2001_s15   ;;  %s1593_s30 = sphi %s1683_s30, %s2003_s30   ;;  %s1589_s29 = sphi %s1681_s29, %s2002_s29  }
   0x6   : > { %s1305_s18 = sadd.s32 4294967294, %s1601_s16   ;;  %s1706_s19 = sadd.s32 1, %s1601_s16  }
   0x7   : > { %1992 = sst [smem:[#allocation6_spill]] %s1706_s19  ;;  %s388_s20 = sadd.s32 1, %s1597_s15 }
   0x8   : > { %s385_s21 = ssub.s32 %s1601_s16, %s1706_s19  ;;  %p398_p0 = scmp.ne.s32.totalorder %s1597_s15, %s1593_s30 }
   0x9   : > { %p386_p1 = scmp.eq.s32.totalorder %s385_s21, 0  ;;  %p399_p2 = scmp.eq.s32.totalorder %s1702_s17, 1 }
   0xa   : > { %p404_p3 = scmp.ne.s32.totalorder %s1593_s30, %s1589_s29  ;;  %p405_p4 = scmp.eq.s32.totalorder %s1305_s18, 1 }
   0xb   : > { %s1717_s22 = scalar_select %p386_p1, %s1597_s15, %s388_s20  }
   0xc   : > { %p1719_p5 = por %p399_p2, %p398_p0  ;;  %p1723_p6 = por %p405_p4, %p404_p3 }
   0xd   : > { %1993 = sst [smem:[#allocation7_spill]] %s1717_s22  ;;  %p1308_p7 = scmp.ge.s32.totalorder %s1601_s16, 1 }
   0xe   : > { %s1995_s24 = scalar_select %p1723_p6, 1, 0 }
   0xf   : > { %p513_p8 = scmp.lt.s32.totalorder %s1601_s16, 3 }
  0x10   : > { %1996 = sst [smem:[#allocation8_spill]] %s1995_s24 }
  0x11   : > { %p514_p9 = pnand %p1308_p7, %p513_p8 }
  0x12   : > { %s1997_s0 = sld [smem:[#allocation9_spill]] (!%p514_p9)  ;;  %p602_p10 = scmp.lt.s32.totalorder (!%p514_p9), %s1702_s17, 1 }
  0x13   : > { %517 = sbr.rel (%p514_p9) target bundleno = 511 (0x1ff), region = 76  ;;  %s599_s21 = sand.u32 (!%p514_p9), 1, %s1593_s30  }
  0x18   : > { %v665_v0 = vld [vmem:[%s1997_s0 + $0x78] sm:$0xff]  ;;  %v1735_v1 = vld [vmem:[%s1972_s1 + $0x28] sm:$0xff]  ;;  %v1603_v2 = vmov 0.0   ;;  %v664_v3 = vld [vmem:[%s1997_s0 + $0x70] sm:$0xff]  ;;  %s603_s26 = scalar_select %p602_p10, %s1702_s17, 1  ;;  %vm750_vm0 = vcmask 392192  }
  0x19   : > { %1376 = vmatprep.subr.mxu0 %v1603_v2  ;;  %1411 = vmatprep.subr.mxu1 %v1603_v2  ;;  %v1746_v4 = vld [vmem:[%s1972_s1 + $0x20] sm:$0xff]  ;;  %v663_v5 = vld [vmem:[%s1997_s0 + $0x68] sm:$0xff]  ;;  %v1758_v6 = vld [vmem:[%s1972_s1 + $0x18] sm:$0xff]  ;;  %vm1604_vm1 = vmmov 0   ;;  %vm827_vm2 = vcmask 130048   ;;  %vm1080_vm3 = vcmask 7168  }
  0x1a   : > { %1377 = vmatpush3.msra.mxu0 %v665_v0  ;;  %1412 = vmatpush3.msra.mxu1 %v1735_v1  ;;  %s1761_s20 = sshll.u32 %s603_s26, 3  ;;  %v662_v7 = vld [vmem:[%s1997_s0 + $0x60] sm:$0xff]  ;;  %v1771_v8 = vld [vmem:[%s1972_s1 + $0x10] sm:$0xff]  ;;  %v661_v11 = vld [vmem:[%s1997_s0 + $0x58] sm:$0xff]  ;;  %vm1082_vm4 = vcmask 15360   ;;  %vm1084_vm5 = vcmask 23552  }
  0x1b   : > { %1378 = vmatprep.subr.mxu0 %v1603_v2  ;;  %1413 = vmatprep.subr.mxu1 %v1603_v2  ;;  %s609_s26 = scalar_lea.vmem %s1974_s3, %s1761_s20  ;;  %s617_s24 = scalar_lea.vmem %s1976_s5, %s1761_s20  ;;  %v1792_v12 = vld [vmem:[%s1972_s1 + $0x8] sm:$0xff]  ;;  %v660_v14 = vld [vmem:[%s1997_s0 + $0x50] sm:$0xff]  ;;  %v1804_v15 = vld [vmem:[%s1972_s1] sm:$0xff]  ;;  %vm1086_vm6 = vcmask 31744   ;;  %vm1088_vm7 = vcmask 39936   ;;  %vm1090_vm8 = vcmask 48128  }
  0x1c   : > { %1379 = vmatpush3.msra.mxu0 %v664_v3  ;;  %1414 = vmatpush3.msra.mxu1 %v1746_v4  ;;  %v1782_v9 = vld [vmem:[%s609_s26] sm:$0xff]  ;;  %v659_v17 = vld [vmem:[%s1997_s0 + $0x48] sm:$0xff]  ;;  %v657_v19 = vld [vmem:[%s1997_s0 + $0x38] sm:$0xff]  ;;  %s605_s15 = scalar_lea.vmem %s1973_s2, %s1761_s20  ;;  %s613_s22 = scalar_lea.vmem %s1975_s4, %s1761_s20  ;;  %vm1092_vm9 = vcmask 56320   ;;  %vm1098_vm10 = vcmask 64512  }
  0x1d   : > { %1380 = vmatprep.subr.mxu0 %v1603_v2  ;;  %1415 = vmatprep.subr.mxu1 %v1603_v2  ;;  %v675_v10 = vld [vmem:[%s617_s24] sm:$0xff]  ;;  %v656_v20 = vld [vmem:[%s1997_s0 + $0x30] sm:$0xff]  ;;  %v655_v21 = vld [vmem:[%s1997_s0 + $0x28] sm:$0xff]  ;;  %s637_s24 = scalar_lea.vmem %s1981_s10, %s1761_s20  ;;  %s633_s26 = scalar_lea.vmem %s1980_s9, %s1761_s20 }
  0x1e   : > { %1381 = vmatpush3.msra.mxu0 %v663_v5  ;;  %1416 = vmatpush3.msra.mxu1 %v1758_v6  ;;  %v748_v13 = vsub.f32 %v675_v10, %v1782_v9  ;;  %v658_v18 = vld [vmem:[%s1997_s0 + $0x40] sm:$0xff]  ;;  %v653_v23 = vld [vmem:[%s1997_s0 + $0x18] sm:$0xff]  ;;  %v652_v24 = vld [vmem:[%s1997_s0 + $0x10] sm:$0xff]  ;;  %s621_s27 = scalar_lea.vmem %s1977_s6, %s1761_s20  ;;  %s629_s19 = scalar_lea.vmem %s1979_s8, %s1761_s20 }
  0x1f   : > { %1382 = vmatprep.subr.mxu0 %v1603_v2  ;;  %1417 = vmatprep.subr.mxu1 %v1603_v2  ;;  %v654_v22 = vld [vmem:[%s1997_s0 + $0x20] sm:$0xff]  ;;  %v651_v27 = vld [vmem:[%s1997_s0 + $0x8] sm:$0xff]  ;;  %s625_s18 = scalar_lea.vmem %s1978_s7, %s1761_s20  ;;  %s645_s25 = scalar_lea.vmem %s1983_s12, %s1761_s20 }
  0x20   : > { %1383 = vmatpush3.msra.mxu0 %v662_v7  ;;  %1418 = vmatpush3.msra.mxu1 %v1771_v8  ;;  %v749_v16 = vmul.f32 %v748_v13, %v748_v13  ;;  %v672_v25 = vld [vmem:[%s605_s15] sm:$0xff]  ;;  %s641_s15 = scalar_lea.vmem %s1982_s11, %s1761_s20 }
  0x21   : > { %1384 = vmatprep.subr.mxu0 %v1603_v2  ;;  %1419 = vmatprep.subr.mxu1 %v1603_v2  ;;  %v674_v26 = vld [vmem:[%s613_s22] sm:$0xff]  ;;  %s649_s22 = scalar_lea.vmem %s1984_s13, %s1761_s20 }
  0x22   : > { %1385 = vmatpush3.msra.mxu0 %v661_v11  ;;  %1420 = vmatpush3.msra.mxu1 %v1792_v12  ;;  %v650_v28 = vld [vmem:[%s1997_s0] sm:$0xff]  ;;  %v676_v29 = vmul.f32 %v674_v26, %v672_v25 }
  0x23   : > { %1386 = vmatprep.subr.mxu0 %v1603_v2  ;;  %1421 = vmatprep.subr.mxu1 %v1603_v2  ;;  %v879_v30 = vld [vmem:[%s637_s24] sm:$0xff]  ;;  %s1325_s24 = sshll.u32 %s1702_s17, 7 }
  0x24   : > { %1387 = vmatpush3.msra.mxu0 %v660_v14  ;;  %1422 = vmatpush3.msra.mxu1 %v1804_v15  ;;  %v878_v31 = vld [vmem:[%s633_s26] sm:$0xff]  ;;  %v952_v32 = vsub.f32 %v879_v30, %v1782_v9 }
  0x25   : > { %1423 = vmatprep.mubr.msk.f32.mxu1 %vm1604_vm1, %v1603_v2  ;;  %1388 = vmatprep.subr.mxu0 %v1603_v2  ;;  %v880_v33 = vmul.f32 %v878_v31, %v672_v25  ;;  %v852_v35 = vld [vmem:[%s621_s27] sm:$0xff]  ;;  %s1309_s27 = sshll.u32 %s599_s21, 3 }
  0x26   : > { %1424 = vmatmul.mubr.msk.f32.vlgmr.msra.gmra.mxu1 %vm750_vm0, %v749_v16  ;;  %1426 = vmatprep.subr.mxu1 %v1603_v2  ;;  %v953_v34 = vmul.f32 %v952_v32, %v952_v32  ;;  %v854_v36 = vld [vmem:[%s629_s19] sm:$0xff] }
  0x27   : > { %1389 = vmatpush3.msra.mxu0 %v659_v17  ;;  %1427 = vmatpush3.msra.mxu1 %v665_v0  ;;  %v857_v37 = vmul.f32 %v854_v36, %v852_v35  ;;  %v853_v38 = vld [vmem:[%s625_s18] sm:$0xff] }
  0x28   : > { %1390 = vmatprep.subr.mxu0 %v1603_v2  ;;  %1428 = vmatprep.subr.mxu1 %v1603_v2  ;;  %v855_v39 = vsub.f32 %v853_v38, %v852_v35  ;;  %v1055_v62 = vld [vmem:[%s645_s25] sm:$0xff] }
  0x29   : > { %1391 = vmatpush3.msra.mxu0 %v658_v18  ;;  %1429 = vmatpush3.msra.mxu1 %v664_v3  ;;  %v1054_v0 = vld [vmem:[%s641_s15] sm:$0xff] }
  0x2a   : > { %1392 = vmatprep.subr.mxu0 %v1603_v2  ;;  %1430 = vmatprep.subr.mxu1 %v1603_v2  ;;  %v856_v40 = vmul.f32 %v855_v39, %v855_v39 }
  0x2b   : > { %1393 = vmatpush3.msra.mxu0 %v657_v19  ;;  %1431 = vmatpush3.msra.mxu1 %v663_v5 }
  0x2c   : > { %1394 = vmatprep.subr.mxu0 %v1603_v2  ;;  %1432 = vmatprep.subr.mxu1 %v1603_v2 }
  0x2d   : > { %1395 = vmatpush3.msra.mxu0 %v656_v20  ;;  %1433 = vmatpush3.msra.mxu1 %v662_v7 }
  0x2e   : > { %1396 = vmatprep.subr.mxu0 %v1603_v2  ;;  %1434 = vmatprep.subr.mxu1 %v1603_v2 }
  0x2f   : > { %1397 = vmatpush3.msra.mxu0 %v655_v21  ;;  %1435 = vmatpush3.msra.mxu1 %v661_v11 }
  0x30   : > { %1398 = vmatprep.subr.mxu0 %v1603_v2  ;;  %1436 = vmatprep.subr.mxu1 %v1603_v2 }
  0x31   : > { %1399 = vmatpush3.msra.mxu0 %v654_v22  ;;  %1437 = vmatpush3.msra.mxu1 %v660_v14 }
  0x32   : > { %1400 = vmatprep.subr.mxu0 %v1603_v2  ;;  %1438 = vmatprep.subr.mxu1 %v1603_v2 }
  0x33   : > { %1401 = vmatpush3.msra.mxu0 %v653_v23  ;;  %1439 = vmatpush3.msra.mxu1 %v659_v17 }
  0x34   : > { %1402 = vmatprep.subr.mxu0 %v1603_v2  ;;  %1440 = vmatprep.subr.mxu1 %v1603_v2 }
  0x35   : > { %1403 = vmatpush3.msra.mxu0 %v652_v24  ;;  %1441 = vmatpush3.msra.mxu1 %v658_v18 }
  0x36   : > { %1404 = vmatprep.subr.mxu0 %v1603_v2  ;;  %1442 = vmatprep.subr.mxu1 %v1603_v2 }
  0x37   : > { %1405 = vmatpush3.msra.mxu0 %v651_v27  ;;  %1443 = vmatpush3.msra.mxu1 %v657_v19 }
  0x38   : > { %1406 = vmatprep.subr.mxu0 %v1603_v2  ;;  %1444 = vmatprep.subr.mxu1 %v1603_v2 }
  0x39   : > { %1407 = vmatpush3.msra.mxu0 %v650_v28  ;;  %1408 = vmatprep.mubr.msk.f32.mxu0 %vm1604_vm1, %v1603_v2 }
  0x3a   : > { %1445 = vmatpush3.msra.mxu1 %v656_v20  ;;  %1409 = vmatmul.mubr.f32.vlgmr.msra.gmra.mxu0 %v676_v29 }
  0x3b   : > { %1446 = vmatprep.subr.mxu1 %v1603_v2  ;;  %1458 = vmatprep.mubr.msk.f32.mxu1 %vm1604_vm1, %v1603_v2 }
  0x3c   : > { %1447 = vmatpush3.msra.mxu1 %v655_v21  ;;  %1461 = vmatprep.subr.mxu0 %v1603_v2 }
  0x3d   : > { %1448 = vmatprep.subr.mxu1 %v1603_v2  ;;  %1462 = vmatpush3.msra.mxu0 %v1735_v1  ;;  %v1056_v1 = vld [vmem:[%s649_s22] sm:$0xff] }
  0x3e   : > { %1449 = vmatpush3.msra.mxu1 %v654_v22  ;;  %1463 = vmatprep.subr.mxu0 %v1603_v2 }
  0x3f   : > { %1450 = vmatprep.subr.mxu1 %v1603_v2  ;;  %1464 = vmatpush3.msra.mxu0 %v1746_v4  ;;  %v1057_v4 = vsub.f32 %v1055_v62, %v1054_v0 }
  0x40   : > { %1451 = vmatpush3.msra.mxu1 %v653_v23  ;;  %1465 = vmatprep.subr.mxu0 %v1603_v2 }
  0x41   : > { %1452 = vmatprep.subr.mxu1 %v1603_v2  ;;  %1466 = vmatpush3.msra.mxu0 %v1758_v6  ;;  %v1059_v6 = vmul.f32 %v1056_v1, %v1054_v0 }
  0x42   : > { %1453 = vmatpush3.msra.mxu1 %v652_v24  ;;  %1467 = vmatprep.subr.mxu0 %v1603_v2 }
  0x43   : > { %1454 = vmatprep.subr.mxu1 %v1603_v2  ;;  %1468 = vmatpush3.msra.mxu0 %v1771_v8  ;;  %v1058_v8 = vmul.f32 %v1057_v4, %v1057_v4 }
  0x44   : > { %1455 = vmatpush3.msra.mxu1 %v651_v27  ;;  %1469 = vmatprep.subr.mxu0 %v1603_v2 }
  0x45   : > { %1456 = vmatprep.subr.mxu1 %v1603_v2  ;;  %1470 = vmatpush3.msra.mxu0 %v1792_v12 }
  0x46   : > { %1457 = vmatpush3.msra.mxu1 %v650_v28  ;;  %1471 = vmatprep.subr.mxu0 %v1603_v2 }
  0x47   : > { %1459 = vmatmul.mubr.f32.vlgmr.msra.gmra.mxu1 %v880_v33  ;;  %1472 = vmatpush3.msra.mxu0 %v1804_v15 }
  0x48   : > { %1473 = vmatprep.mubr.msk.f32.mxu0 %vm1604_vm1, %v1603_v2  ;;  %868 = vadd.xlane.f32.xlu1 %v857_v37 }
  0x49   : > { %1474 = vmatmul.mubr.msk.f32.vlgmr.msra.gmra.mxu0 %vm750_vm0, %v953_v34 }
  0x4c   : > { %858 = vadd.xlane.f32.xlu1 %v856_v40 }
  0xd1   : > { %v869_v9 = vpop.xlane.xlu1 %868 }
  0xd2   : > { %v870_v12 = vrot.slane %v869_v9, 4 }
  0xd4   : > { %v871_v14 = vadd.f32 %v870_v12, %v869_v9 }
  0xd5   : > { %v859_v10 = vpop.xlane.xlu1 %858 }
  0xd6   : > { %v860_v11 = vrot.slane %v859_v10, 4  ;;  %v872_v19 = vrot.slane %v871_v14, 2 }
  0xd8   : > { %v861_v13 = vadd.f32 %v860_v11, %v859_v10  ;;  %v873_v26 = vadd.f32 %v872_v19, %v871_v14 }
  0xda   : > { %v862_v18 = vrot.slane %v861_v13, 2  ;;  %v874_v31 = vrot.slane %v873_v26, 1 }
  0xdc   : > { %v863_v24 = vadd.f32 %v862_v18, %v861_v13  ;;  %v875_v40 = vadd.f32 %v874_v31, %v873_v26 }
  0xde   : > { %v864_v29 = vrot.slane %v863_v24, 1 }
  0xe0   : > { %v865_v36 = vadd.f32 %v864_v29, %v863_v24 }
  0xe6   : > { %v820_v41 = vpop.f32.mrf.mxu1 }
  0xe8   : > { %v1425_v42 = vpop.f32.mrf.mxu1 }
  0xfa   : > { %v743_v43 = vpop.f32.mrf.mxu0 }
  0xfb   : > { %v744_v44 = vadd.f32 0.05, %v743_v43 }
  0xfc   : > { %v1410_v45 = vpop.f32.mrf.mxu0 }
  0xfd   : > { %1533 = vrcp.f32 %v744_v44 }
  0xfe   : > { %1535 = vlog2.f32 %v744_v44 }
 0x107   : > { %v947_v46 = vpop.f32.mrf.mxu1 }
 0x108   : > { %v948_v47 = vadd.f32 0.05, %v947_v46 }
 0x109   : > { %v1460_v48 = vpop.f32.mrf.mxu1  ;;  %v1023_v49 = vpop.f32.mrf.mxu0 }
 0x10a   : > { %v1534_v50 = vpop.eup %1533  ;;  %1537 = vrcp.f32 %v948_v47 }
 0x10b   : > { %v1536_v51 = vpop.eup %1535  ;;  %1539 = vlog2.f32 %v948_v47  ;;  %v824_v52 = vmul.f32 0.5, %v1534_v50  ;;  %v1475_v53 = vpop.f32.mrf.mxu0 }
 0x10c   : > { %v840_v54 = vmul.f32 0.6931472, %v1536_v51 }
 0x10d   : > { %v825_v55 = vmul.f32 %v1534_v50, %v824_v52 }
 0x10e   : > { %v841_v56 = vsel %vm827_vm2, %v840_v54, 0.0 }
 0x10f   : > { %842 = vadd.xlane.f32.xlu0 %v841_v56  ;;  %v826_v57 = vmul.f32 %v825_v55, %v820_v41 }
 0x111   : > { %v828_v58 = vsel %vm827_vm2, %v826_v57, 0.0 }
 0x113   : > { %829 = vadd.xlane.f32.xlu0 %v828_v58 }
 0x117   : > { %v1538_v59 = vpop.eup %1537 }
 0x118   : > { %v1540_v60 = vpop.eup %1539  ;;  %v1027_v61 = vmul.f32 0.5, %v1538_v59 }
 0x119   : > { %v1042_v63 = vmul.f32 0.6931472, %v1540_v60 }
 0x11a   : > { %v1028_v2 = vmul.f32 %v1538_v59, %v1027_v61 }
 0x11b   : > { %v1043_v3 = vsel %vm827_vm2, %v1042_v63, 0.0 }
 0x11c   : > { %v1029_v5 = vmul.f32 %v1028_v2, %v1023_v49  ;;  %1044 = vadd.xlane.f32.xlu1 %v1043_v3 }
 0x11e   : > { %v1030_v7 = vsel %vm827_vm2, %v1029_v5, 0.0  ;;  %v1094_v5 = vlaneseq }
 0x11f   : > { %1031 = vadd.xlane.f32.xlu0 %v1030_v7 }
 0x120   : > { %1070 = vadd.xlane.f32.xlu1 %v1059_v6 }
 0x123   : > { %1060 = vadd.xlane.f32.xlu0 %v1058_v8  ;;  %v1095_v8 = vshrl.u32 %v1094_v5, 7 }
 0x125   : > { %v1096_v13 = vsub.s32 0, %v1095_v8 }
 0x198   : > { %v843_v15 = vpop.xlane.xlu0 %842 }
 0x199   : > { %v844_v16 = vrot.slane %v843_v15, 4 }
 0x19b   : > { %v845_v17 = vadd.f32 %v844_v16, %v843_v15 }
 0x19c   : > { %v830_v20 = vpop.xlane.xlu0 %829 }
 0x19d   : > { %v846_v21 = vrot.slane %v845_v17, 2  ;;  %v831_v22 = vrot.slane %v830_v20, 4 }
 0x19f   : > { %v832_v23 = vadd.f32 %v831_v22, %v830_v20  ;;  %v847_v25 = vadd.f32 %v846_v21, %v845_v17 }
 0x1a1   : > { %v833_v27 = vrot.slane %v832_v23, 2  ;;  %v848_v30 = vrot.slane %v847_v25, 1 }
 0x1a3   : > { %v834_v28 = vadd.f32 %v833_v27, %v832_v23  ;;  %v849_v39 = vadd.f32 %v848_v30, %v847_v25 }
 0x1a5   : > { %v1045_v32 = vpop.xlane.xlu1 %1044  ;;  %v835_v33 = vrot.slane %v834_v28, 1 }
 0x1a6   : > { %v1046_v34 = vrot.slane %v1045_v32, 4 }
 0x1a7   : > { %v836_v35 = vadd.f32 %v835_v33, %v834_v28 }
 0x1a8   : > { %v1047_v37 = vadd.f32 %v1046_v34, %v1045_v32  ;;  %v1032_v38 = vpop.xlane.xlu0 %1031 }
 0x1a9   : > { %v1071_v41 = vpop.xlane.xlu1 %1070  ;;  %v1033_v42 = vrot.slane %v1032_v38, 4  ;;  %1476 = vpush %v836_v35 }
 0x1aa   : > { %v1048_v43 = vrot.slane %v1047_v37, 2  ;;  %v1072_v44 = vrot.slane %v1071_v41, 4  ;;  %1478 = vpush %v849_v39 }
 0x1ab   : > { %v1034_v45 = vadd.f32 %v1033_v42, %v1032_v38  ;;  %1480 = vpush %v865_v36 }
 0x1ac   : > { %v1073_v46 = vadd.f32 %v1072_v44, %v1071_v41  ;;  %1482 = vpush %v875_v40  ;;  %v1061_v47 = vpop.xlane.xlu0 %1060  ;;  %v1049_v48 = vadd.f32 %v1048_v43, %v1047_v37 }
 0x1ad   : > { %v1035_v49 = vrot.slane %v1034_v45, 2  ;;  %v1062_v50 = vrot.slane %v1061_v47, 4 }
 0x1ae   : > { %v1074_v51 = vrot.slane %v1073_v46, 2  ;;  %v1050_v55 = vrot.slane %v1049_v48, 1 }
 0x1af   : > { %v1063_v52 = vadd.f32 %v1062_v50, %v1061_v47  ;;  %v1036_v53 = vadd.f32 %v1035_v49, %v1034_v45 }
 0x1b0   : > { %v1075_v54 = vadd.f32 %v1074_v51, %v1073_v46  ;;  %v1051_v60 = vadd.f32 %v1050_v55, %v1049_v48 }
 0x1b1   : > { %v1064_v56 = vrot.slane %v1063_v52, 2  ;;  %v1037_v57 = vrot.slane %v1036_v53, 1 }
 0x1b2   : > { %v1076_v61 = vrot.slane %v1075_v54, 1 }
 0x1b3   : > { %v1065_v58 = vadd.f32 %v1064_v56, %v1063_v52  ;;  %v1038_v59 = vadd.f32 %v1037_v57, %v1036_v53 }
 0x1b4   : > { %v1077_v0 = vadd.f32 %v1076_v61, %v1075_v54 }
 0x1b5   : > { %1484 = vpush %v1038_v59  ;;  %v1066_v62 = vrot.slane %v1065_v58, 1 }
 0x1b6   : > { %1486 = vpush %v1051_v60 }
 0x1b7   : > { %v1067_v63 = vadd.f32 %v1066_v62, %v1065_v58 }
 0x1b9   : > { %1488 = vpush %v1067_v63 }
 0x1ba   : > { %1490 = vpush %v1077_v0 }
 0x1da   : > { %s1477_s20 = spop %1476 }
 0x1db   : > { %s1479_s18 = spop %1478  ;;  %v838_v1 = vstv %s1477_s20  ;;  %s601_s20 = scalar_lea.vmem [#allocation2], %s1309_s27 }
 0x1dc   : > { %v851_v2 = vstv %s1479_s18  ;;  %s1481_s26 = spop %1480  ;;  %s1114_s18 = sshll.u32 %s601_s20, 4  ;;  %s1115_s18 = int_to_ptr.vmem [resolvable:$true] %s1114_s18 }
 0x1dd   : > { %v1081_v3 = vsel %vm1080_vm3, %v838_v1, %v851_v2  ;;  %v867_v4 = vstv %s1481_s26  ;;  %s1483_s25 = spop %1482  ;;  %s1541_s17 = scalar_lea.vmem %s1115_s18, 128 }
 0x1de   : > { %v1083_v6 = vsel %vm1082_vm4, %v1081_v3, %v867_v4  ;;  %v877_v7 = vstv %s1483_s25  ;;  %p1542_p11 = scmp.ne.s32.totalorder %s1115_s18, %s1541_s17  ;;  %s1605_s27 = smov [#allocation2]  }
 0x1df   : > { %v1085_v9 = vsel %vm1084_vm5, %v1083_v6, %v877_v7 }
 0x1e0   : > { %p1543_p12 = pnand %p1542_p11, %p1719_p5 }
 0x1e2   : > { %p1544_p13 = pneg %p1543_p12 }
 0x1e6   : > { %s1485_s28 = spop %1484 }
 0x1e7   : > { %v1040_v10 = vstv %s1485_s28  ;;  %s1487_s15 = spop %1486  ;;  %s1112_s28 = scalar_lea.hbm %s1985_s14, %s1325_s24 }
 0x1e8   : > { %v1087_v11 = vsel %vm1086_vm6, %v1085_v9, %v1040_v10  ;;  %v1053_v12 = vstv %s1487_s15  ;;  %s1101_s15 = scalar_lea.sflag [#allocation3], %s599_s21 }
 0x1e9   : > { %v1089_v14 = vsel %vm1088_vm7, %v1087_v11, %v1053_v12 }
 0x1ea   : > { %s1489_s19 = spop %1488 }
 0x1eb   : > { %v1069_v15 = vstv %s1489_s19  ;;  %s1491_s22 = spop %1490  ;;  %s1545_s19 = sshll.u32 %s1605_s27, 4  ;;  %s1546_s19 = int_to_ptr.vmem [resolvable:$false] %s1545_s19 }
 0x1ec   : > { %v1091_v16 = vsel %vm1090_vm8, %v1089_v14, %v1069_v15  ;;  %v1079_v17 = vstv %s1491_s22  ;;  %s1547_s22 = scalar_lea.vmem %s1546_s19, 256  ;;  %p1548_p0 = scmp.lt.s32.totalorder %s1115_s18, %s1546_s19 }
 0x1ed   : > { %v1093_v18 = vsel %vm1092_vm9, %v1091_v16, %v1079_v17  ;;  %p1549_p1 = scmp.lt.s32.totalorder %s1547_s22, %s1541_s17 }
 0x1ee   : > { %v1097_v19 = vrot.slane %v1093_v18, %v1096_v13 }
 0x1ef   : > { %p1550_p2 = por %p1549_p1, %p1548_p0 }
 0x1f0   : > { %1099 = vst.msk [vmem:[%s601_s20] sm:$0xff] %vm1098_vm10, %v1097_v19 }
 0x1f1   : > { %p1551_p3 = pnand %p1550_p2, %p1544_p13 }
 0x1f3   : > { %1554 = shalt.err (!%p1551_p3)
}
 0x1f4   : > { %s1555_s26 = scalar_lea.hbm %s1112_s28, 128  ;;  %s1559_s20 = scalar_lea.hbm %s1985_s14, 256 }
 0x1f5   : > { %p1556_p4 = scmp.ne.s32.totalorder %s1112_s28, %s1555_s26  ;;  %p1560_p9 = scmp.lt.s32.totalorder %s1112_s28, %s1985_s14 }
 0x1f6   : > { %p1561_p10 = scmp.lt.s32.totalorder %s1559_s20, %s1555_s26 }
 0x1f7   : > { %p1557_p7 = pnand %p1556_p4, %p1719_p5 }
 0x1f8   : > { %p1562_p11 = por %p1561_p10, %p1560_p9 }
 0x1f9   : > { %p1558_p8 = pneg %p1557_p7 }
 0x1fb   : > { %p1563_p12 = pnand %p1562_p11, %p1558_p8 }
 0x1fd   : > { %1566 = shalt.err (!%p1563_p12)
}
 0x1fe   : > { %1492 = dma.vmem_to_hbm [thread:$0]  (%p1719_p5), %s1115_s18, 128, %s1112_s28, %s1101_s15  }
 0x1ff PF: > { %p1498_p13 = scmp.ge.s32.totalorder %s1601_s16, 2  ;;  %s1126_s27 = sand.u32 1, %s1589_s29  }
 0x200   : > { %s1127_s19 = scalar_lea.sflag [#allocation3], %s1126_s27 }
 0x201   : > { %p1495_p0 = pnand %p1498_p13, %p1723_p6 }
 0x203   : > { %p1496_p1 = pneg %p1495_p0 }
 0x205   : > { %1584 = dma.done.wait (%p1496_p1), %s1127_s19, 128  }
 0x206   : > { %1586 = vsyncadd (%p1496_p1), %s1127_s19, 4294967168  ;;  %s1999_s16 = sld [smem:[#allocation6_spill]]  ;;  %s2002_s29 = smov %s1593_s30 }
 0x207   : > { %s2000_s0 = sld [smem:[#allocation5_spill]] }
 0x208   : > { %s2001_s15 = sld [smem:[#allocation7_spill]] }
 0x20c   : > { %p24_p2 = scmp.ge.s32.totalorder %s1999_s16, 4  }
 0x20d   : > { %s2003_s30 = smov %s2000_s0 }
 0x20e   :  { %26 = sbr.rel (!%p24_p2) target bundleno = 5 (0x5), region = 144 }
 0x213   :  { %1132 = vsyncpa [#allocation3], 1 }
 0x214   :  { %1134 = vsyncpa [#allocation3 + $0x1], 1 }

</bundles_post_ra>
